<compile_context>
chip_gen: v5e
topology: v5e:2x2
jax: 0.10.0
libtpu: 0.0.40
codegen_flags: <defaults>
</compile_context>

<pallas_src>
import functools

import jax
import jax.numpy as jnp
from jax.experimental import pallas as pl
from jax.experimental.pallas import tpu as pltpu


def _layer_norm_f32(v, gamma, beta, eps=1e-5):
    # PyTorch nn.LayerNorm: biased variance over last dim, eps inside rsqrt.
    mu = jnp.mean(v, axis=-1, keepdims=True)
    var = jnp.mean((v - mu) ** 2, axis=-1, keepdims=True)
    return (v - mu) * jax.lax.rsqrt(var + eps) * gamma + beta


def _encoder_layer_kernel(
    x_ref,                          # (bt*S, D)   f32
    wqkv_ref, bqkv_ref,             # (D, 3*H*D) bf16, (1, 3*H*D) f32
    wo_ref, bo_ref,                 # (H*D, D)   bf16, (1, D)     f32
    ln1g_ref, ln1b_ref,             # (1, D) f32
    ln2g_ref, ln2b_ref,             # (1, D) f32
    w1_ref, b1_ref,                 # (D, F) bf16, (1, F) f32
    w2_ref, b2_ref,                 # (F, D) bf16, (1, D) f32
    o_ref,                          # (bt*S, D)
    *, n_heads, block_batch, seq_len, d_model,
):
    H, Bt, S, D = n_heads, block_batch, seq_len, d_model
    HD = H * D
    scale = D ** (-0.5)

    x = x_ref[...].astype(jnp.float32)                       # (Bt*S, D)

    # ---------- sublayer 1: multi-head self-attention over norm_1(x) ----------
    xn = _layer_norm_f32(x, ln1g_ref[0], ln1b_ref[0])         # f32

    # Fused Q/K/V projection: one wide bf16 matmul (f32 accumulation) + one
    # bias broadcast.  Layout of columns: [q heads | k heads | v heads].
    qkv = jnp.dot(xn.astype(jnp.bfloat16), wqkv_ref[...],
                  preferred_element_type=jnp.float32) + bqkv_ref[0]   # (Bt*S, 3*H*D)

    ctx_heads = []
    for h in range(H):                                        # H is small & static
        q = qkv[:, h * D:(h + 1) * D].reshape(Bt, S, D)
        k = qkv[:, HD + h * D:HD + (h + 1) * D].reshape(Bt, S, D)
        v = qkv[:, 2 * HD + h * D:2 * HD + (h + 1) * D].reshape(Bt, S, D)

        logits = jnp.einsum(
            "bqd,bkd->bqk",
            q.astype(jnp.bfloat16), k.astype(jnp.bfloat16),
            preferred_element_type=jnp.float32) * scale       # (Bt, S, S) f32
        logits = logits - jnp.max(logits, axis=-1, keepdims=True)
        p = jnp.exp(logits)                                   # f32 softmax
        p = p * pl.reciprocal(jnp.sum(p, axis=-1, keepdims=True), approx=True)

        ctx = jnp.einsum(
            "bqk,bkd->bqd",
            p.astype(jnp.bfloat16), v.astype(jnp.bfloat16),
            preferred_element_type=jnp.float32)               # (Bt, S, D) f32
        ctx_heads.append(ctx.reshape(Bt * S, D).astype(jnp.bfloat16))

    concat = jnp.concatenate(ctx_heads, axis=-1)              # (Bt*S, H*D) bf16
    attn = jnp.dot(concat, wo_ref[...],
                   preferred_element_type=jnp.float32) + bo_ref[0]

    # dropout_1 == identity (eval mode)
    x = x + attn

    # ---------- sublayer 2: feed-forward over norm_2(x) ----------
    xn2 = _layer_norm_f32(x, ln2g_ref[0], ln2b_ref[0])
    h1 = jnp.dot(xn2.astype(jnp.bfloat16), w1_ref[...],
                 preferred_element_type=jnp.float32) + b1_ref[0]
    h1 = jnp.maximum(h1, 0.0)                                 # ReLU (inner dropout = id)
    ff = jnp.dot(h1.astype(jnp.bfloat16), w2_ref[...],
                 preferred_element_type=jnp.float32) + b2_ref[0]

    # dropout_2 == identity (eval mode)
    o_ref[...] = (x + ff).astype(o_ref.dtype)


def _pick_block_batch(B, S):
    """Largest batch block bt (divisor of B) so bt*S ~ 128 rows and the block's
    sublane dim (bt*S) is a multiple of 8 (or the block covers the whole batch)."""
    target = max(1, -(-128 // S))            # cdiv(128, S)
    if B <= target:
        return B
    for cand in range(target, 0, -1):
        if B % cand == 0 and (cand * S) % 8 == 0:
            return cand
    return B


def encoder_layer(x, params, *, block_batch=None):
    """x: (B, S, D) float32.  params: dict of stacked weights (see init_params)."""
    B, S, D = x.shape
    H = params["wq"].shape[0]
    F = params["w1"].shape[-1]
    HD = H * D

    bt = _pick_block_batch(B, S) if block_batch is None else block_batch
    assert B % bt == 0, "block_batch must divide B"
    rows = bt * S

    # --- fuse / cast weights in the wrapper (plain XLA ops, outside the kernel) ---
    def head_stack(w):  # (H, D, D) -> (D, H*D), so cols [h*D:(h+1)*D] == x @ w[h]
        return jnp.transpose(w, (1, 0, 2)).reshape(D, HD)

    w_qkv = jnp.concatenate(
        [head_stack(params["wq"]), head_stack(params["wk"]), head_stack(params["wv"])],
        axis=1).astype(jnp.bfloat16)                                   # (D, 3*H*D)
    b_qkv = jnp.concatenate(
        [params["bq"].reshape(HD), params["bk"].reshape(HD), params["bv"].reshape(HD)]
    ).reshape(1, 3 * HD).astype(jnp.float32)

    weights = [
        (w_qkv, (D, 3 * HD)),
        (b_qkv, (1, 3 * HD)),
        (params["wo"].astype(jnp.bfloat16), (HD, D)),
        (params["bo"], (1, D)),
        (params["ln1_g"], (1, D)), (params["ln1_b"], (1, D)),
        (params["ln2_g"], (1, D)), (params["ln2_b"], (1, D)),
        (params["w1"].astype(jnp.bfloat16), (D, F)),
        (params["b1"], (1, F)),
        (params["w2"].astype(jnp.bfloat16), (F, D)),
        (params["b2"], (1, D)),
    ]

    x2 = x.reshape(B * S, D)

    in_specs = [pl.BlockSpec((rows, D), lambda i: (i, 0))]
    in_specs += [pl.BlockSpec(shape, lambda i: (0, 0)) for _, shape in weights]

    kernel = functools.partial(
        _encoder_layer_kernel,
        n_heads=H, block_batch=bt, seq_len=S, d_model=D)

    out2 = pl.pallas_call(
        kernel,
        out_shape=jax.ShapeDtypeStruct((B * S, D), x.dtype),
        grid_spec=pltpu.PrefetchScalarGridSpec(
            num_scalar_prefetch=0,
            grid=(B // bt,),
            in_specs=in_specs,
            out_specs=pl.BlockSpec((rows, D), lambda i: (i, 0)),
        ),
        compiler_params=pltpu.CompilerParams(
            dimension_semantics=("parallel",)),
    )(x2, *[w for w, _ in weights])

    return out2.reshape(B, S, D)


def init_params(key, d_model, n_heads, d_ff):
    """Deterministic synthetic parameters.

    Linear weights are stored already transposed to (in, out) so the math is
    y = x @ W + b (equivalent to PyTorch's x @ W.T + b)."""
    ks = jax.random.split(key, 12)
    s = 0.05
    D, H, F = d_model, n_heads, d_ff
    return {
        "wq": s * jax.random.normal(ks[0], (H, D, D), jnp.float32),
        "bq": s * jax.random.normal(ks[1], (H, D), jnp.float32),
        "wk": s * jax.random.normal(ks[2], (H, D, D), jnp.float32),
        "bk": s * jax.random.normal(ks[3], (H, D), jnp.float32),
        "wv": s * jax.random.normal(ks[4], (H, D, D), jnp.float32),
        "bv": s * jax.random.normal(ks[5], (H, D), jnp.float32),
        "wo": s * jax.random.normal(ks[6], (H * D, D), jnp.float32),
        "bo": s * jax.random.normal(ks[7], (1, D), jnp.float32),
        "ln1_g": jnp.ones((1, D), jnp.float32),
        "ln1_b": jnp.zeros((1, D), jnp.float32),
        "ln2_g": jnp.ones((1, D), jnp.float32),
        "ln2_b": jnp.zeros((1, D), jnp.float32),
        "w1": s * jax.random.normal(ks[8], (D, F), jnp.float32),
        "b1": s * jax.random.normal(ks[9], (1, F), jnp.float32),
        "w2": s * jax.random.normal(ks[10], (F, D), jnp.float32),
        "b2": s * jax.random.normal(ks[11], (1, D), jnp.float32),
    }


def _reference(x, p):
    """Pure-JAX f32 reference mirroring the PyTorch forward (dropout = identity)."""
    def ln(v, g, b):
        mu = v.mean(-1, keepdims=True)
        var = ((v - mu) ** 2).mean(-1, keepdims=True)
        return (v - mu) / jnp.sqrt(var + 1e-5) * g + b

    xn = ln(x, p["ln1_g"][0], p["ln1_b"][0])
    D = x.shape[-1]
    heads = []
    for h in range(p["wq"].shape[0]):
        q = xn @ p["wq"][h] + p["bq"][h]
        k = xn @ p["wk"][h] + p["bk"][h]
        v = xn @ p["wv"][h] + p["bv"][h]
        sc = jax.nn.softmax(jnp.einsum("bqd,bkd->bqk", q, k) * D ** -0.5, axis=-1)
        heads.append(jnp.einsum("bqk,bkd->bqd", sc, v))
    attn = jnp.concatenate(heads, -1) @ p["wo"] + p["bo"][0]
    x = x + attn
    xn2 = ln(x, p["ln2_g"][0], p["ln2_b"][0])
    ff = jnp.maximum(xn2 @ p["w1"] + p["b1"][0], 0.0) @ p["w2"] + p["b2"][0]
    return x + ff


if __name__ == "__main__":
    B, S, D, H, F = 2, 8, 32, 2, 256
    key = jax.random.PRNGKey(0)
    kx, kp = jax.random.split(key)
    x = jax.random.normal(kx, (B, S, D), jnp.float32)
    params = init_params(kp, D, H, F)

    out = encoder_layer(x, params)
    out = jax.block_until_ready(out)

    ref = _reference(x, params)
    assert out.shape == (B, S, D)
    # bf16 MXU operands (per perf review) => relaxed tolerance vs the f32 reference.
    assert jnp.allclose(out, ref, atol=3e-2, rtol=3e-2), "mismatch vs reference"
    print("KERNEL_OK")
</pallas_src>

<mosaic_0001>
module attributes {stable_mosaic.version = 11 : i64} {
  func.func @_encoder_layer_kernel(%arg0: i32, %arg1: memref<16x32xf32, #tpu.memory_space<vmem>>, %arg2: memref<32x192xbf16, #tpu.memory_space<vmem>>, %arg3: memref<1x192xf32, #tpu.memory_space<vmem>>, %arg4: memref<64x32xbf16, #tpu.memory_space<vmem>>, %arg5: memref<1x32xf32, #tpu.memory_space<vmem>>, %arg6: memref<1x32xf32, #tpu.memory_space<vmem>>, %arg7: memref<1x32xf32, #tpu.memory_space<vmem>>, %arg8: memref<1x32xf32, #tpu.memory_space<vmem>>, %arg9: memref<1x32xf32, #tpu.memory_space<vmem>>, %arg10: memref<32x256xbf16, #tpu.memory_space<vmem>>, %arg11: memref<1x256xf32, #tpu.memory_space<vmem>>, %arg12: memref<256x32xbf16, #tpu.memory_space<vmem>>, %arg13: memref<1x32xf32, #tpu.memory_space<vmem>>, %arg14: memref<16x32xf32, #tpu.memory_space<vmem>>) attributes {dimension_semantics = [#tpu.dimension_semantics<parallel>], iteration_bounds = array<i64: 1>, scalar_prefetch = 0 : i64, scratch_operands = 0 : i64, tpu.core_type = #tpu.core_type<tc>, window_params = [{transform_indices = @transform_0, window_bounds = array<i64: 16, 32>}, {pipeline_mode = #tpu.pipeline_mode<synchronous>, transform_indices = @transform_1, window_bounds = array<i64: 32, 192>}, {pipeline_mode = #tpu.pipeline_mode<synchronous>, transform_indices = @transform_2, window_bounds = array<i64: 1, 192>}, {pipeline_mode = #tpu.pipeline_mode<synchronous>, transform_indices = @transform_3, window_bounds = array<i64: 64, 32>}, {pipeline_mode = #tpu.pipeline_mode<synchronous>, transform_indices = @transform_4, window_bounds = array<i64: 1, 32>}, {pipeline_mode = #tpu.pipeline_mode<synchronous>, transform_indices = @transform_5, window_bounds = array<i64: 1, 32>}, {pipeline_mode = #tpu.pipeline_mode<synchronous>, transform_indices = @transform_6, window_bounds = array<i64: 1, 32>}, {pipeline_mode = #tpu.pipeline_mode<synchronous>, transform_indices = @transform_7, window_bounds = array<i64: 1, 32>}, {pipeline_mode = #tpu.pipeline_mode<synchronous>, transform_indices = @transform_8, window_bounds = array<i64: 1, 32>}, {pipeline_mode = #tpu.pipeline_mode<synchronous>, transform_indices = @transform_9, window_bounds = array<i64: 32, 256>}, {pipeline_mode = #tpu.pipeline_mode<synchronous>, transform_indices = @transform_10, window_bounds = array<i64: 1, 256>}, {pipeline_mode = #tpu.pipeline_mode<synchronous>, transform_indices = @transform_11, window_bounds = array<i64: 256, 32>}, {pipeline_mode = #tpu.pipeline_mode<synchronous>, transform_indices = @transform_12, window_bounds = array<i64: 1, 32>}, {transform_indices = @transform_13, window_bounds = array<i64: 16, 32>}]} {
    %c0 = arith.constant 0 : index
    %c0_0 = arith.constant 0 : index
    %0 = vector.load %arg1[%c0, %c0_0] : memref<16x32xf32, #tpu.memory_space<vmem>>, vector<16x32xf32>
    %c0_1 = arith.constant 0 : index
    %c0_2 = arith.constant 0 : index
    %1 = vector.load %arg6[%c0_1, %c0_2] : memref<1x32xf32, #tpu.memory_space<vmem>>, vector<1x32xf32>
    %2 = vector.shape_cast %1 : vector<1x32xf32> to vector<32xf32>
    %c0_3 = arith.constant 0 : index
    %c0_4 = arith.constant 0 : index
    %3 = vector.load %arg7[%c0_3, %c0_4] : memref<1x32xf32, #tpu.memory_space<vmem>>, vector<1x32xf32>
    %4 = vector.shape_cast %3 : vector<1x32xf32> to vector<32xf32>
    %cst = arith.constant dense<0.000000e+00> : vector<16xf32>
    %5 = vector.multi_reduction <add>, %0, %cst [1] : vector<16x32xf32> to vector<16xf32>
    %6 = vector.shape_cast %5 : vector<16xf32> to vector<16x1xf32>
    %cst_5 = arith.constant 3.200000e+01 : f32
    %7 = vector.broadcast %cst_5 : f32 to vector<16x1xf32>
    %8 = arith.divf %6, %7 : vector<16x1xf32>
    %9 = vector.broadcast %8 : vector<16x1xf32> to vector<16x32xf32>
    %10 = arith.subf %0, %9 : vector<16x32xf32>
    %11 = arith.mulf %10, %10 : vector<16x32xf32>
    %cst_6 = arith.constant dense<0.000000e+00> : vector<16xf32>
    %12 = vector.multi_reduction <add>, %11, %cst_6 [1] : vector<16x32xf32> to vector<16xf32>
    %13 = vector.shape_cast %12 : vector<16xf32> to vector<16x1xf32>
    %cst_7 = arith.constant 3.200000e+01 : f32
    %14 = vector.broadcast %cst_7 : f32 to vector<16x1xf32>
    %15 = arith.divf %13, %14 : vector<16x1xf32>
    %16 = vector.broadcast %8 : vector<16x1xf32> to vector<16x32xf32>
    %17 = arith.subf %0, %16 : vector<16x32xf32>
    %cst_8 = arith.constant 9.99999974E-6 : f32
    %18 = vector.broadcast %cst_8 : f32 to vector<16x1xf32>
    %19 = arith.addf %15, %18 : vector<16x1xf32>
    %20 = math.rsqrt %19 : vector<16x1xf32>
    %21 = vector.broadcast %20 : vector<16x1xf32> to vector<16x32xf32>
    %22 = arith.mulf %17, %21 : vector<16x32xf32>
    %23 = vector.shape_cast %2 : vector<32xf32> to vector<1x32xf32>
    %24 = vector.broadcast %23 : vector<1x32xf32> to vector<16x32xf32>
    %25 = arith.mulf %22, %24 : vector<16x32xf32>
    %26 = vector.shape_cast %4 : vector<32xf32> to vector<1x32xf32>
    %27 = vector.broadcast %26 : vector<1x32xf32> to vector<16x32xf32>
    %28 = arith.addf %25, %27 : vector<16x32xf32>
    %29 = arith.truncf %28 : vector<16x32xf32> to vector<16x32xbf16>
    %c0_9 = arith.constant 0 : index
    %c0_10 = arith.constant 0 : index
    %30 = vector.load %arg2[%c0_9, %c0_10] : memref<32x192xbf16, #tpu.memory_space<vmem>>, vector<32x192xbf16>
    %cst_11 = arith.constant dense<0.000000e+00> : vector<16x192xf32>
    %31 = tpu.matmul %29, %30, %cst_11 {dimension_numbers = #tpu.dot_dimension_numbers<[1], [0], [0], [1], [0, 0, 1, 1], [], []>} : vector<16x32xbf16>, vector<32x192xbf16>, vector<16x192xf32> -> vector<16x192xf32>
    %c0_12 = arith.constant 0 : index
    %c0_13 = arith.constant 0 : index
    %32 = vector.load %arg3[%c0_12, %c0_13] : memref<1x192xf32, #tpu.memory_space<vmem>>, vector<1x192xf32>
    %33 = vector.shape_cast %32 : vector<1x192xf32> to vector<192xf32>
    %34 = vector.shape_cast %33 : vector<192xf32> to vector<1x192xf32>
    %35 = vector.broadcast %34 : vector<1x192xf32> to vector<16x192xf32>
    %36 = arith.addf %31, %35 : vector<16x192xf32>
    %37 = vector.extract_strided_slice %36 {offsets = [0, 0], sizes = [16, 32], strides = [1, 1]} : vector<16x192xf32> to vector<16x32xf32>
    %38 = vector.shape_cast %37 : vector<16x32xf32> to vector<2x8x32xf32>
    %39 = vector.extract_strided_slice %36 {offsets = [0, 64], sizes = [16, 32], strides = [1, 1]} : vector<16x192xf32> to vector<16x32xf32>
    %40 = vector.shape_cast %39 : vector<16x32xf32> to vector<2x8x32xf32>
    %41 = vector.extract_strided_slice %36 {offsets = [0, 128], sizes = [16, 32], strides = [1, 1]} : vector<16x192xf32> to vector<16x32xf32>
    %42 = vector.shape_cast %41 : vector<16x32xf32> to vector<2x8x32xf32>
    %43 = arith.truncf %38 : vector<2x8x32xf32> to vector<2x8x32xbf16>
    %44 = arith.truncf %40 : vector<2x8x32xf32> to vector<2x8x32xbf16>
    "tpu.trace_start"() <{level = 10 : i32, message = "bqd,bkd->bqk"}> : () -> ()
    %cst_14 = arith.constant dense<0.000000e+00> : vector<2x8x8xf32>
    %45 = tpu.matmul %43, %44, %cst_14 {dimension_numbers = #tpu.dot_dimension_numbers<[2], [2], [1], [1], [0, 0, 0, 1, 1, 1], [0], [0]>} : vector<2x8x32xbf16>, vector<2x8x32xbf16>, vector<2x8x8xf32> -> vector<2x8x8xf32>
    "tpu.trace_stop"() : () -> ()
    %cst_15 = arith.constant 0.176776692 : f32
    %46 = vector.broadcast %cst_15 : f32 to vector<2x8x8xf32>
    %47 = arith.mulf %45, %46 : vector<2x8x8xf32>
    %cst_16 = arith.constant dense<0xFF800000> : vector<2x8xf32>
    %48 = vector.multi_reduction <maximumf>, %47, %cst_16 [2] : vector<2x8x8xf32> to vector<2x8xf32>
    %49 = vector.shape_cast %48 : vector<2x8xf32> to vector<2x8x1xf32>
    %50 = vector.broadcast %49 : vector<2x8x1xf32> to vector<2x8x8xf32>
    %51 = arith.subf %47, %50 : vector<2x8x8xf32>
    %52 = math.exp %51 : vector<2x8x8xf32>
    %cst_17 = arith.constant dense<0.000000e+00> : vector<2x8xf32>
    %53 = vector.multi_reduction <add>, %52, %cst_17 [2] : vector<2x8x8xf32> to vector<2x8xf32>
    %54 = vector.shape_cast %53 : vector<2x8xf32> to vector<2x8x1xf32>
    %55 = tpu.reciprocal %54 {approx = true} : vector<2x8x1xf32> -> vector<2x8x1xf32>
    %56 = vector.broadcast %55 : vector<2x8x1xf32> to vector<2x8x8xf32>
    %57 = arith.mulf %52, %56 : vector<2x8x8xf32>
    %58 = arith.truncf %57 : vector<2x8x8xf32> to vector<2x8x8xbf16>
    %59 = arith.truncf %42 : vector<2x8x32xf32> to vector<2x8x32xbf16>
    "tpu.trace_start"() <{level = 10 : i32, message = "bqk,bkd->bqd"}> : () -> ()
    %cst_18 = arith.constant dense<0.000000e+00> : vector<2x8x32xf32>
    %60 = tpu.matmul %58, %59, %cst_18 {dimension_numbers = #tpu.dot_dimension_numbers<[2], [1], [1], [2], [0, 0, 0, 1, 1, 2], [0], [0]>} : vector<2x8x8xbf16>, vector<2x8x32xbf16>, vector<2x8x32xf32> -> vector<2x8x32xf32>
    "tpu.trace_stop"() : () -> ()
    %61 = vector.shape_cast %60 : vector<2x8x32xf32> to vector<16x32xf32>
    %62 = arith.truncf %61 : vector<16x32xf32> to vector<16x32xbf16>
    %63 = vector.extract_strided_slice %36 {offsets = [0, 32], sizes = [16, 32], strides = [1, 1]} : vector<16x192xf32> to vector<16x32xf32>
    %64 = vector.shape_cast %63 : vector<16x32xf32> to vector<2x8x32xf32>
    %65 = vector.extract_strided_slice %36 {offsets = [0, 96], sizes = [16, 32], strides = [1, 1]} : vector<16x192xf32> to vector<16x32xf32>
    %66 = vector.shape_cast %65 : vector<16x32xf32> to vector<2x8x32xf32>
    %67 = vector.extract_strided_slice %36 {offsets = [0, 160], sizes = [16, 32], strides = [1, 1]} : vector<16x192xf32> to vector<16x32xf32>
    %68 = vector.shape_cast %67 : vector<16x32xf32> to vector<2x8x32xf32>
    %69 = arith.truncf %64 : vector<2x8x32xf32> to vector<2x8x32xbf16>
    %70 = arith.truncf %66 : vector<2x8x32xf32> to vector<2x8x32xbf16>
    "tpu.trace_start"() <{level = 10 : i32, message = "bqd,bkd->bqk"}> : () -> ()
    %cst_19 = arith.constant dense<0.000000e+00> : vector<2x8x8xf32>
    %71 = tpu.matmul %69, %70, %cst_19 {dimension_numbers = #tpu.dot_dimension_numbers<[2], [2], [1], [1], [0, 0, 0, 1, 1, 1], [0], [0]>} : vector<2x8x32xbf16>, vector<2x8x32xbf16>, vector<2x8x8xf32> -> vector<2x8x8xf32>
    "tpu.trace_stop"() : () -> ()
    %cst_20 = arith.constant 0.176776692 : f32
    %72 = vector.broadcast %cst_20 : f32 to vector<2x8x8xf32>
    %73 = arith.mulf %71, %72 : vector<2x8x8xf32>
    %cst_21 = arith.constant dense<0xFF800000> : vector<2x8xf32>
    %74 = vector.multi_reduction <maximumf>, %73, %cst_21 [2] : vector<2x8x8xf32> to vector<2x8xf32>
    %75 = vector.shape_cast %74 : vector<2x8xf32> to vector<2x8x1xf32>
    %76 = vector.broadcast %75 : vector<2x8x1xf32> to vector<2x8x8xf32>
    %77 = arith.subf %73, %76 : vector<2x8x8xf32>
    %78 = math.exp %77 : vector<2x8x8xf32>
    %cst_22 = arith.constant dense<0.000000e+00> : vector<2x8xf32>
    %79 = vector.multi_reduction <add>, %78, %cst_22 [2] : vector<2x8x8xf32> to vector<2x8xf32>
    %80 = vector.shape_cast %79 : vector<2x8xf32> to vector<2x8x1xf32>
    %81 = tpu.reciprocal %80 {approx = true} : vector<2x8x1xf32> -> vector<2x8x1xf32>
    %82 = vector.broadcast %81 : vector<2x8x1xf32> to vector<2x8x8xf32>
    %83 = arith.mulf %78, %82 : vector<2x8x8xf32>
    %84 = arith.truncf %83 : vector<2x8x8xf32> to vector<2x8x8xbf16>
    %85 = arith.truncf %68 : vector<2x8x32xf32> to vector<2x8x32xbf16>
    "tpu.trace_start"() <{level = 10 : i32, message = "bqk,bkd->bqd"}> : () -> ()
    %cst_23 = arith.constant dense<0.000000e+00> : vector<2x8x32xf32>
    %86 = tpu.matmul %84, %85, %cst_23 {dimension_numbers = #tpu.dot_dimension_numbers<[2], [1], [1], [2], [0, 0, 0, 1, 1, 2], [0], [0]>} : vector<2x8x8xbf16>, vector<2x8x32xbf16>, vector<2x8x32xf32> -> vector<2x8x32xf32>
    "tpu.trace_stop"() : () -> ()
    %87 = vector.shape_cast %86 : vector<2x8x32xf32> to vector<16x32xf32>
    %88 = arith.truncf %87 : vector<16x32xf32> to vector<16x32xbf16>
    %89 = tpu.concatenate %62, %88 in 1 : vector<16x32xbf16>, vector<16x32xbf16> -> vector<16x64xbf16>
    %c0_24 = arith.constant 0 : index
    %c0_25 = arith.constant 0 : index
    %90 = vector.load %arg4[%c0_24, %c0_25] : memref<64x32xbf16, #tpu.memory_space<vmem>>, vector<64x32xbf16>
    %cst_26 = arith.constant dense<0.000000e+00> : vector<16x32xf32>
    %91 = tpu.matmul %89, %90, %cst_26 {dimension_numbers = #tpu.dot_dimension_numbers<[1], [0], [0], [1], [0, 0, 1, 1], [], []>} : vector<16x64xbf16>, vector<64x32xbf16>, vector<16x32xf32> -> vector<16x32xf32>
    %c0_27 = arith.constant 0 : index
    %c0_28 = arith.constant 0 : index
    %92 = vector.load %arg5[%c0_27, %c0_28] : memref<1x32xf32, #tpu.memory_space<vmem>>, vector<1x32xf32>
    %93 = vector.shape_cast %92 : vector<1x32xf32> to vector<32xf32>
    %94 = vector.shape_cast %93 : vector<32xf32> to vector<1x32xf32>
    %95 = vector.broadcast %94 : vector<1x32xf32> to vector<16x32xf32>
    %96 = arith.addf %91, %95 : vector<16x32xf32>
    %97 = arith.addf %0, %96 : vector<16x32xf32>
    %c0_29 = arith.constant 0 : index
    %c0_30 = arith.constant 0 : index
    %98 = vector.load %arg8[%c0_29, %c0_30] : memref<1x32xf32, #tpu.memory_space<vmem>>, vector<1x32xf32>
    %99 = vector.shape_cast %98 : vector<1x32xf32> to vector<32xf32>
    %c0_31 = arith.constant 0 : index
    %c0_32 = arith.constant 0 : index
    %100 = vector.load %arg9[%c0_31, %c0_32] : memref<1x32xf32, #tpu.memory_space<vmem>>, vector<1x32xf32>
    %101 = vector.shape_cast %100 : vector<1x32xf32> to vector<32xf32>
    %cst_33 = arith.constant dense<0.000000e+00> : vector<16xf32>
    %102 = vector.multi_reduction <add>, %97, %cst_33 [1] : vector<16x32xf32> to vector<16xf32>
    %103 = vector.shape_cast %102 : vector<16xf32> to vector<16x1xf32>
    %cst_34 = arith.constant 3.200000e+01 : f32
    %104 = vector.broadcast %cst_34 : f32 to vector<16x1xf32>
    %105 = arith.divf %103, %104 : vector<16x1xf32>
    %106 = vector.broadcast %105 : vector<16x1xf32> to vector<16x32xf32>
    %107 = arith.subf %97, %106 : vector<16x32xf32>
    %108 = arith.mulf %107, %107 : vector<16x32xf32>
    %cst_35 = arith.constant dense<0.000000e+00> : vector<16xf32>
    %109 = vector.multi_reduction <add>, %108, %cst_35 [1] : vector<16x32xf32> to vector<16xf32>
    %110 = vector.shape_cast %109 : vector<16xf32> to vector<16x1xf32>
    %cst_36 = arith.constant 3.200000e+01 : f32
    %111 = vector.broadcast %cst_36 : f32 to vector<16x1xf32>
    %112 = arith.divf %110, %111 : vector<16x1xf32>
    %113 = vector.broadcast %105 : vector<16x1xf32> to vector<16x32xf32>
    %114 = arith.subf %97, %113 : vector<16x32xf32>
    %cst_37 = arith.constant 9.99999974E-6 : f32
    %115 = vector.broadcast %cst_37 : f32 to vector<16x1xf32>
    %116 = arith.addf %112, %115 : vector<16x1xf32>
    %117 = math.rsqrt %116 : vector<16x1xf32>
    %118 = vector.broadcast %117 : vector<16x1xf32> to vector<16x32xf32>
    %119 = arith.mulf %114, %118 : vector<16x32xf32>
    %120 = vector.shape_cast %99 : vector<32xf32> to vector<1x32xf32>
    %121 = vector.broadcast %120 : vector<1x32xf32> to vector<16x32xf32>
    %122 = arith.mulf %119, %121 : vector<16x32xf32>
    %123 = vector.shape_cast %101 : vector<32xf32> to vector<1x32xf32>
    %124 = vector.broadcast %123 : vector<1x32xf32> to vector<16x32xf32>
    %125 = arith.addf %122, %124 : vector<16x32xf32>
    %126 = arith.truncf %125 : vector<16x32xf32> to vector<16x32xbf16>
    %c0_38 = arith.constant 0 : index
    %c0_39 = arith.constant 0 : index
    %127 = vector.load %arg10[%c0_38, %c0_39] : memref<32x256xbf16, #tpu.memory_space<vmem>>, vector<32x256xbf16>
    %cst_40 = arith.constant dense<0.000000e+00> : vector<16x256xf32>
    %128 = tpu.matmul %126, %127, %cst_40 {dimension_numbers = #tpu.dot_dimension_numbers<[1], [0], [0], [1], [0, 0, 1, 1], [], []>} : vector<16x32xbf16>, vector<32x256xbf16>, vector<16x256xf32> -> vector<16x256xf32>
    %c0_41 = arith.constant 0 : index
    %c0_42 = arith.constant 0 : index
    %129 = vector.load %arg11[%c0_41, %c0_42] : memref<1x256xf32, #tpu.memory_space<vmem>>, vector<1x256xf32>
    %130 = vector.shape_cast %129 : vector<1x256xf32> to vector<256xf32>
    %131 = vector.shape_cast %130 : vector<256xf32> to vector<1x256xf32>
    %132 = vector.broadcast %131 : vector<1x256xf32> to vector<16x256xf32>
    %133 = arith.addf %128, %132 : vector<16x256xf32>
    %cst_43 = arith.constant 0.000000e+00 : f32
    %134 = vector.broadcast %cst_43 : f32 to vector<16x256xf32>
    %135 = arith.maximumf %133, %134 : vector<16x256xf32>
    %136 = arith.truncf %135 : vector<16x256xf32> to vector<16x256xbf16>
    %c0_44 = arith.constant 0 : index
    %c0_45 = arith.constant 0 : index
    %137 = vector.load %arg12[%c0_44, %c0_45] : memref<256x32xbf16, #tpu.memory_space<vmem>>, vector<256x32xbf16>
    %cst_46 = arith.constant dense<0.000000e+00> : vector<16x32xf32>
    %138 = tpu.matmul %136, %137, %cst_46 {dimension_numbers = #tpu.dot_dimension_numbers<[1], [0], [0], [1], [0, 0, 1, 1], [], []>} : vector<16x256xbf16>, vector<256x32xbf16>, vector<16x32xf32> -> vector<16x32xf32>
    %c0_47 = arith.constant 0 : index
    %c0_48 = arith.constant 0 : index
    %139 = vector.load %arg13[%c0_47, %c0_48] : memref<1x32xf32, #tpu.memory_space<vmem>>, vector<1x32xf32>
    %140 = vector.shape_cast %139 : vector<1x32xf32> to vector<32xf32>
    %141 = vector.shape_cast %140 : vector<32xf32> to vector<1x32xf32>
    %142 = vector.broadcast %141 : vector<1x32xf32> to vector<16x32xf32>
    %143 = arith.addf %138, %142 : vector<16x32xf32>
    %144 = arith.addf %97, %143 : vector<16x32xf32>
    %c0_49 = arith.constant 0 : index
    %c0_50 = arith.constant 0 : index
    %145 = vector.load %arg14[%c0_49, %c0_50] : memref<16x32xf32, #tpu.memory_space<vmem>>, vector<16x32xf32>
    tpu.vector_store %arg14[%c0_49, %c0_50], %144 {strides = array<i32>} : memref<16x32xf32, #tpu.memory_space<vmem>>, vector<16x32xf32>,
    return
  }
  func.func @transform_0(%arg0: i32) -> (i32, i32) {
    %c0_i32 = arith.constant 0 : i32
    %c0_i32_0 = arith.constant 0 : i32
    return %arg0, %c0_i32 : i32, i32
  }
  func.func @transform_1(%arg0: i32) -> (i32, i32) {
    %c0_i32 = arith.constant 0 : i32
    %c0_i32_0 = arith.constant 0 : i32
    %c0_i32_1 = arith.constant 0 : i32
    return %c0_i32, %c0_i32_0 : i32, i32
  }
  func.func @transform_2(%arg0: i32) -> (i32, i32) {
    %c0_i32 = arith.constant 0 : i32
    %c0_i32_0 = arith.constant 0 : i32
    %c0_i32_1 = arith.constant 0 : i32
    return %c0_i32, %c0_i32_0 : i32, i32
  }
  func.func @transform_3(%arg0: i32) -> (i32, i32) {
    %c0_i32 = arith.constant 0 : i32
    %c0_i32_0 = arith.constant 0 : i32
    %c0_i32_1 = arith.constant 0 : i32
    return %c0_i32, %c0_i32_0 : i32, i32
  }
  func.func @transform_4(%arg0: i32) -> (i32, i32) {
    %c0_i32 = arith.constant 0 : i32
    %c0_i32_0 = arith.constant 0 : i32
    %c0_i32_1 = arith.constant 0 : i32
    return %c0_i32, %c0_i32_0 : i32, i32
  }
  func.func @transform_5(%arg0: i32) -> (i32, i32) {
    %c0_i32 = arith.constant 0 : i32
    %c0_i32_0 = arith.constant 0 : i32
    %c0_i32_1 = arith.constant 0 : i32
    return %c0_i32, %c0_i32_0 : i32, i32
  }
  func.func @transform_6(%arg0: i32) -> (i32, i32) {
    %c0_i32 = arith.constant 0 : i32
    %c0_i32_0 = arith.constant 0 : i32
    %c0_i32_1 = arith.constant 0 : i32
    return %c0_i32, %c0_i32_0 : i32, i32
  }
  func.func @transform_7(%arg0: i32) -> (i32, i32) {
    %c0_i32 = arith.constant 0 : i32
    %c0_i32_0 = arith.constant 0 : i32
    %c0_i32_1 = arith.constant 0 : i32
    return %c0_i32, %c0_i32_0 : i32, i32
  }
  func.func @transform_8(%arg0: i32) -> (i32, i32) {
    %c0_i32 = arith.constant 0 : i32
    %c0_i32_0 = arith.constant 0 : i32
    %c0_i32_1 = arith.constant 0 : i32
    return %c0_i32, %c0_i32_0 : i32, i32
  }
  func.func @transform_9(%arg0: i32) -> (i32, i32) {
    %c0_i32 = arith.constant 0 : i32
    %c0_i32_0 = arith.constant 0 : i32
    %c0_i32_1 = arith.constant 0 : i32
    return %c0_i32, %c0_i32_0 : i32, i32
  }
  func.func @transform_10(%arg0: i32) -> (i32, i32) {
    %c0_i32 = arith.constant 0 : i32
    %c0_i32_0 = arith.constant 0 : i32
    %c0_i32_1 = arith.constant 0 : i32
    return %c0_i32, %c0_i32_0 : i32, i32
  }
  func.func @transform_11(%arg0: i32) -> (i32, i32) {
    %c0_i32 = arith.constant 0 : i32
    %c0_i32_0 = arith.constant 0 : i32
    %c0_i32_1 = arith.constant 0 : i32
    return %c0_i32, %c0_i32_0 : i32, i32
  }
  func.func @transform_12(%arg0: i32) -> (i32, i32) {
    %c0_i32 = arith.constant 0 : i32
    %c0_i32_0 = arith.constant 0 : i32
    %c0_i32_1 = arith.constant 0 : i32
    return %c0_i32, %c0_i32_0 : i32, i32
  }
  func.func @transform_13(%arg0: i32) -> (i32, i32) {
    %c0_i32 = arith.constant 0 : i32
    %c0_i32_0 = arith.constant 0 : i32
    return %arg0, %c0_i32 : i32, i32
  }
}

</mosaic_0001>

<bundles_post_ra>
// kernel: tpu_custom_call.1
= control target key start
LH: loop header
LB: loop body
LE: loop exit
PB: predicated region body
PF: predicated region fallthrough
CT: control target
= control target key end

     0   :  { %vm50_vm0 = vcmask 261120   ;;  %s1327_s0 = inlined_call_operand.vmem [shape: f32[16,32], index: 0, kind: input, shape index: {}]   ;;  %s1328_s1 = inlined_call_operand.vmem [shape: bf16[32,192], index: 1, kind: input, shape index: {}]   ;;  %s1329_s2 = inlined_call_operand.vmem [shape: f32[1,192], index: 2, kind: input, shape index: {}]   ;;  %s1330_s3 = inlined_call_operand.vmem [shape: bf16[64,32], index: 3, kind: input, shape index: {}]   ;;  %s1331_s4 = inlined_call_operand.vmem [shape: f32[1,32], index: 4, kind: input, shape index: {}]   ;;  %s1332_s5 = inlined_call_operand.vmem [shape: f32[1,32], index: 5, kind: input, shape index: {}]   ;;  %s1333_s6 = inlined_call_operand.vmem [shape: f32[1,32], index: 6, kind: input, shape index: {}]   ;;  %s1334_s7 = inlined_call_operand.vmem [shape: f32[1,32], index: 7, kind: input, shape index: {}]   ;;  %s1335_s8 = inlined_call_operand.vmem [shape: f32[1,32], index: 8, kind: input, shape index: {}]   ;;  %s1336_s9 = inlined_call_operand.vmem [shape: bf16[32,256], index: 9, kind: input, shape index: {}]   ;;  %s1337_s10 = inlined_call_operand.vmem [shape: f32[1,256], index: 10, kind: input, shape index: {}]   ;;  %s1338_s11 = inlined_call_operand.vmem [shape: bf16[256,32], index: 11, kind: input, shape index: {}]   ;;  %s1339_s12 = inlined_call_operand.vmem [shape: f32[1,32], index: 12, kind: input, shape index: {}]   ;;  %s1340_s13 = inlined_call_operand.hbm [shape: f32[16,32], index: 13, kind: output, shape index: {}]  }
   0x1   :  { %v1090_v0 = vld [vmem:[%s1327_s0] sm:$0xff] }
   0x2   :  { %v51_v1 = vsel %vm50_vm0, %v1090_v0, 0.0 }
   0x3   :  { %52 = vadd.xlane.f32.xlu0 %v51_v1 }
   0x4   :  { %18 = vsyncpa [#allocation3], 0  ;;  %v1097_v2 = vld [vmem:[%s1327_s0 + $0x8] sm:$0xff]  ;;  %v1010_v4 = vmov 32.0   ;;  %v802_v21 = vld [vmem:[%s1328_s1 + $0x10] sm:$0xf] }
   0x5   :  { %v54_v3 = vsel %vm50_vm0, %v1097_v2, 0.0  ;;  %958 = vrcp.f32 %v1010_v4  ;;  %v920_v22 = vld [vmem:[%s1328_s1 + $0x14] sm:$0xf0]  ;;  %v919_v23 = vld [vmem:[%s1328_s1 + $0x14] sm:$0xf]  ;;  %vm256_vm8 = vcmask 1043456  }
   0x6   :  { %v803_v24 = vor.u32 %v920_v22, %v802_v21  ;;  %v804_v25 = vld [vmem:[%s1328_s1 + $0x18] sm:$0xf0]  ;;  %v794_v27 = vld [vmem:[%s1328_s1] sm:$0xf]  ;;  %v918_v28 = vld [vmem:[%s1328_s1 + $0x4] sm:$0xf0] }
   0x7   :  { %v807_v26 = vor.u32 %v919_v23, %v804_v25  ;;  %v917_v29 = vld [vmem:[%s1328_s1 + $0x4] sm:$0xf]  ;;  %v795_v31 = vor.u32 %v918_v28, %v794_v27  ;;  %v796_v32 = vld [vmem:[%s1328_s1 + $0x8] sm:$0xf0]  ;;  %v952_v52 = vld [vmem:[%s1332_s5] ss:$0 sm:$0xff] }
   0x8   :  { %152 = vmatpush.bf16.msra.mxu0 %v803_v24  ;;  %v799_v34 = vor.u32 %v917_v29, %v796_v32  ;;  %v953_v57 = vld [vmem:[%s1333_s6] ss:$0 sm:$0xff]  ;;  %s1011_s6 = smov 64   ;;  %s1013_s30 = smov 96   ;;  %vm226_vm9 = vcmask 64512   ;;  %vm467_vm10 = vcmask 523264  }
   0x9   :  { %166 = vmatpush.bf16.msra.mxu3 %v807_v26  ;;  %v117_v62 = vld [vmem:[%s1329_s2] sm:$0x3]  ;;  %s1012_s2 = smov 32   ;;  %s1014_s24 = smov [#allocation2]  }
   0xa   :  { %v119_v63 = vperm.slane %v117_v62, 0  ;;  %s778_s25 = sshll.u32 %s1014_s24, 4  ;;  %s780_s27 = sshll.u32 %s1340_s13, 4  ;;  %s779_s25 = int_to_ptr.vmem [resolvable:$true] %s778_s25  ;;  %s781_s27 = int_to_ptr.hbm [resolvable:$true] %s780_s27 }
   0xb   :  { %55 = vadd.xlane.f32.xlu0 %v54_v3  ;;  %v959_v5 = vpop.eup %958  ;;  %s1016_s28 = smov 8  }
   0xc   :  { %v58_v6 = vmul.f32 32.0, %v959_v5  ;;  %vm62_vm1 = vweird.f32 %v959_v5  ;;  %153 = vmatpush.bf16.msra.mxu0 %v795_v31 }
   0xd   :  { %167 = vmatpush.bf16.msra.mxu3 %v799_v34 }
   0xe   :  { %v59_v7 = vsub.f32 1.0, %v58_v6 }
  0x10   :  { %v60_v8 = vmul.f32 %v959_v5, %v59_v7 }
  0x12   :  { %v61_v9 = vadd.f32 %v959_v5, %v60_v8 }
  0x14   :  { %v1101_v10 = vsel %vm62_vm1, %v959_v5, %v61_v9  ;;  %v120_v5 = vperm.slane %v117_v62, 1 }
  0x76   :  { %v53_v11 = vpop.xlane.xlu0 %52 }
  0x77   :  { %v64_v12 = vmul.f32 %v1101_v10, %v53_v11 }
  0x79   :  { %v66_v13 = vsub.f32 %v1090_v0, %v64_v12 }
  0x7b   :  { %v68_v14 = vmul.f32 %v66_v13, %v66_v13 }
  0x7d   :  { %v70_v15 = vsel %vm50_vm0, %v68_v14, 0.0 }
  0x7e   :  { %71 = vadd.xlane.f32.xlu1 %v70_v15  ;;  %v56_v16 = vpop.xlane.xlu0 %55 }
  0x7f   :  { %v65_v17 = vmul.f32 %v1101_v10, %v56_v16 }
  0x81   :  { %v67_v18 = vsub.f32 %v1097_v2, %v65_v17 }
  0x83   :  { %v69_v19 = vmul.f32 %v67_v18, %v67_v18 }
  0x85   :  { %v73_v20 = vsel %vm50_vm0, %v69_v19, 0.0 }
  0x86   :  { %74 = vadd.xlane.f32.xlu1 %v73_v20 }
  0xf1   :  { %v72_v30 = vpop.xlane.xlu1 %71 }
  0xf2   :  { %v76_v33 = vmul.f32 %v72_v30, %v1101_v10 }
  0xf4   :  { %v78_v35 = vadd.f32 1e-05, %v76_v33 }
  0xf6   :  { %960 = vrsqrt.f32 %v78_v35  ;;  %vm86_vm3 = vweird.f32 %v78_v35 }
  0xf9   :  { %v75_v36 = vpop.xlane.xlu1 %74 }
  0xfa   :  { %v77_v37 = vmul.f32 %v75_v36, %v1101_v10 }
  0xfc   :  { %v961_v38 = vpop.eup %960  ;;  %v79_v39 = vadd.f32 1e-05, %v77_v37 }
  0xfd   :  { %v81_v40 = vmul.f32 %v961_v38, %v78_v35  ;;  %vm87_vm2 = vweird.f32 %v961_v38 }
  0xfe   :  { %962 = vrsqrt.f32 %v79_v39  ;;  %vm88_vm4 = vmor %vm86_vm3, %vm87_vm2  ;;  %vm96_vm6 = vweird.f32 %v79_v39 }
  0xff   :  { %v82_v41 = vmul.f32 %v961_v38, %v81_v40 }
 0x101   :  { %v83_v42 = vmul.f32 0.5, %v82_v41 }
 0x103   :  { %v84_v43 = vsub.f32 1.5, %v83_v42 }
 0x104   :  { %v963_v44 = vpop.eup %962 }
 0x105   :  { %v85_v45 = vmul.f32 %v961_v38, %v84_v43  ;;  %v91_v46 = vmul.f32 %v963_v44, %v79_v39  ;;  %vm97_vm5 = vweird.f32 %v963_v44 }
 0x106   :  { %vm98_vm7 = vmor %vm96_vm6, %vm97_vm5 }
 0x107   :  { %v92_v47 = vmul.f32 %v963_v44, %v91_v46  ;;  %v89_v48 = vsel %vm88_vm4, %v961_v38, %v85_v45 }
 0x108   :  { %v100_v51 = vmul.f32 %v89_v48, %v66_v13 }
 0x109   :  { %v93_v49 = vmul.f32 0.5, %v92_v47 }
 0x10a   :  { %v105_v56 = vmul.f32 %v952_v52, %v100_v51 }
 0x10b   :  { %v94_v50 = vsub.f32 1.5, %v93_v49 }
 0x10c   :  { %v110_v59 = vadd.f32 %v953_v57, %v105_v56 }
 0x10d   :  { %v95_v53 = vmul.f32 %v963_v44, %v94_v50 }
 0x10f   :  { %v99_v54 = vsel %vm98_vm7, %v963_v44, %v95_v53 }
 0x110   :  { %v101_v55 = vmul.f32 %v99_v54, %v67_v18 }
 0x112   :  { %v106_v58 = vmul.f32 %v952_v52, %v101_v55 }
 0x114   :  { %v111_v60 = vadd.f32 %v953_v57, %v106_v58 }
 0x116   :  { %v112_v61 = vpack.c.bf16 %v111_v60, %v110_v59 }
 0x118   :  { %808 = vmatmul.msk.bf16.vlgmr.msra.gmra.mxu0 %vm50_vm0, %v112_v61  ;;  %809 = vmatmul.msk.bf16.vlgmr.msra.gmra.mxu3 %vm50_vm0, %v112_v61 }
 0x195   :  { %v155_v1 = vpop.f32.mrf.mxu0 }
 0x196   :  { %v156_v3 = vadd.f32 %v155_v1, %v119_v63 }
 0x198   :  { %v174_v4 = vpack.c.bf16 %v156_v3, %v156_v3 }
 0x19a   :  { %v177_v6 = vunpack.c.l.b16 %v174_v4 }
 0x19b   :  { %v169_v7 = vpop.f32.mrf.mxu3 }
 0x19c   :  { %v1146_v8 = vpack.c.b16 %v177_v6, %v177_v6  ;;  %v170_v9 = vadd.f32 %v169_v7, %v120_v5 }
 0x19d   :  { %v157_v11 = vpop.f32.mrf.mxu0 }
 0x19e   :  { %v1148_v12 = vpack.c.bf16 %v170_v9, %v170_v9  ;;  %v158_v13 = vadd.f32 %v157_v11, %v119_v63  ;;  %179 = vrot.lane.b32.xlu0 %v1146_v8, %s1011_s6 }
 0x1a0   :  { %v175_v14 = vpack.c.bf16 %v158_v13, %v158_v13  ;;  %v258_v15 = vsel %vm256_vm8, %v1148_v12, 0 }
 0x1a1   :  { %267 = vmatpush.bf16.msrb.mxu0 %v258_v15 }
 0x1a2   :  { %v201_v16 = vunpack.c.l.b16 %v175_v14 }
 0x1a3   :  { %v171_v17 = vpop.f32.mrf.mxu3 }
 0x1a4   :  { %v202_v18 = vpack.c.b16 %v201_v16, %v201_v16  ;;  %v172_v19 = vadd.f32 %v171_v17, %v120_v5 }
 0x1a6   :  { %v1153_v20 = vpack.c.bf16 %v172_v19, %v172_v19  ;;  %319 = vrot.lane.b32.xlu1 %v202_v18, %s1012_s2  ;;  %203 = vrot.lane.b32.xlu2 %v202_v18, %s1011_s6 }
 0x1a7   :  { %296 = vrot.lane.b32.xlu0 %v1146_v8, %s1012_s2 }
 0x1a8   :  { %v277_v21 = vsel %vm256_vm8, %v1153_v20, 0 }
 0x1a9   :  { %286 = vmatpush.bf16.msra.mxu1 %v277_v21  ;;  %v391_v21 = vunpack.c.l.b16 %v1153_v20 }
 0x1af   :  { %317 = vrot.lane.b32.xlu0 %v202_v18, %s1013_s30 }
 0x200   :  { %v204_v22 = vpop.permute.xlu2 %203 }
 0x201   :  { %v209_v23 = vsel %vm50_vm0, %v204_v22, 0  ;;  %v392_v22 = vpack.c.b16 %v391_v21, %v391_v21  ;;  %v837_v21 = vld [vmem:[%s1336_s9] sm:$0xf] }
 0x202   :  { %218 = vmatpush.bf16.xpose.msrb.mxu3 %v209_v23 }
 0x209   :  { %811 = vmatmul.msk.bf16.vlgmr.msrb.gmra.mxu3 %vm50_vm0, %v175_v14 }
 0x210   :  { %v180_v24 = vpop.permute.xlu0 %179 }
 0x211   :  { %v185_v25 = vsel %vm50_vm0, %v180_v24, 0 }
 0x212   :  { %194 = vmatpush.bf16.xpose.msra.mxu2 %v185_v25 }
 0x218   :  { %v320_v26 = vpop.permute.xlu1 %319 }
 0x219   :  { %v325_v27 = vsel %vm50_vm0, %v320_v26, 0  ;;  %v297_v28 = vpop.permute.xlu0 %296  ;;  %810 = vmatmul.msk.bf16.vlgmr.msra.gmra.mxu2 %vm50_vm0, %v174_v4 }
 0x21a   :  { %v302_v29 = vsel %vm50_vm0, %v297_v28, 0  ;;  %334 = vmatpush.bf16.xpose.msra.mxu3 %v325_v27 }
 0x21b   :  { %311 = vmatpush.bf16.xpose.msrb.mxu1 %v302_v29 }
 0x221   :  { %v318_v30 = vpop.permute.xlu0 %317 }
 0x222   :  { %815 = vmatmul.msk.bf16.vlgmr.msra.gmra.mxu3 %vm50_vm0, %v318_v30 }
 0x28c   :  { %v220_v31 = vpop.f32.mrf.mxu3 }
 0x28d   :  { %v225_v32 = vmul.f32 0.17677669, %v220_v31 }
 0x28f   :  { %v230_v33 = vsel %vm226_vm9, %v225_v32, -inf }
 0x290   :  { %231 = vmax.xlane.f32.xlu2 %v230_v33  ;;  %v367_v33 = vunpack.c.l.b16 %v1148_v12  ;;  %v924_v12 = vld [vmem:[%s1330_s3 + $0x18] sm:$0xff] }
 0x291   :  { %474 = vmatpush.bf16.msrb.mxu2 %v924_v12 }
 0x294   :  { %v222_v34 = vpop.f32.mrf.mxu3 }
 0x295   :  { %v368_v34 = vpack.c.b16 %v367_v33, %v367_v33 }
 0x29c   :  { %v196_v35 = vpop.f32.mrf.mxu2 }
 0x29d   :  { %v224_v36 = vmul.f32 0.17677669, %v196_v35 }
 0x29f   :  { %v227_v37 = vsel %vm226_vm9, %v224_v36, -inf }
 0x2a0   :  { %228 = vmax.xlane.f32.xlu2 %v227_v37 }
 0x2a4   :  { %v198_v38 = vpop.f32.mrf.mxu2 }
 0x2a5   :  { %v336_v39 = vpop.f32.mrf.mxu3 }
 0x2a6   :  { %v341_v51 = vmul.f32 0.17677669, %v336_v39 }
 0x2a8   :  { %v345_v52 = vsel %vm226_vm9, %v341_v51, -inf }
 0x2ad   :  { %v338_v40 = vpop.f32.mrf.mxu3 }
 0x303   :  { %v232_v41 = vpop.xlane.xlu2 %231 }
 0x304   :  { %v234_v42 = vsub.f32 %v225_v32, %v232_v41 }
 0x306   :  { %v237_v43 = vmul.f32 1.442695, %v234_v42 }
 0x308   :  { %964 = vpow2.f32 %v237_v43  ;;  %v923_v43 = vld [vmem:[%s1330_s3 + $0x10] sm:$0xff] }
 0x309   :  { %475 = vmatpush.bf16.msrb.mxu2 %v923_v43 }
 0x30e   :  { %v965_v44 = vpop.eup %964 }
 0x30f   :  { %v242_v45 = vsel %vm226_vm9, %v965_v44, 0.0 }
 0x310   :  { %243 = vadd.xlane.f32.xlu1 %v242_v45  ;;  %v921_v45 = vld [vmem:[%s1330_s3] sm:$0xff] }
 0x313   :  { %v229_v46 = vpop.xlane.xlu2 %228 }
 0x314   :  { %v233_v47 = vsub.f32 %v224_v36, %v229_v46 }
 0x316   :  { %v235_v48 = vmul.f32 1.442695, %v233_v47 }
 0x318   :  { %966 = vpow2.f32 %v235_v48 }
 0x31e   :  { %v967_v49 = vpop.eup %966 }
 0x31f   :  { %v239_v50 = vsel %vm226_vm9, %v967_v49, 0.0 }
 0x320   :  { %240 = vadd.xlane.f32.xlu2 %v239_v50 }
 0x329   :  { %294 = vrot.lane.b32.xlu1 %v1146_v8, %s1013_s30 }
 0x353   :  { %346 = vmax.xlane.f32.xlu1 %v345_v52 }
 0x383   :  { %v244_v53 = vpop.xlane.xlu1 %243 }
 0x384   :  { %968 = vrcp.f32 %v244_v53 }
 0x38a   :  { %v969_v54 = vpop.eup %968 }
 0x38b   :  { %v248_v55 = vmul.f32 %v969_v54, %v965_v44  ;;  %v922_v44 = vld [vmem:[%s1330_s3 + $0x8] sm:$0xff] }
 0x38c   :  { %476 = vmatpush.bf16.msrb.mxu2 %v922_v44 }
 0x38d   :  { %v250_v56 = vpack.c.bf16 %v248_v55, %v248_v55  ;;  %v954_v55 = vld [vmem:[%s1331_s4] ss:$0 sm:$0xff] }
 0x38f   :  { %813 = vmatmul.msk.bf16.vlgmr.msra.gmra.mxu1 %vm226_vm9, %v250_v56 }
 0x390   :  { %477 = vmatpush.bf16.msrb.mxu2 %v921_v45 }
 0x393   :  { %v241_v57 = vpop.xlane.xlu2 %240 }
 0x394   :  { %970 = vrcp.f32 %v241_v57 }
 0x39a   :  { %v971_v58 = vpop.eup %970 }
 0x39b   :  { %v247_v59 = vmul.f32 %v971_v58, %v967_v49  ;;  %v295_v61 = vpop.permute.xlu1 %294 }
 0x39d   :  { %v249_v60 = vpack.c.bf16 %v247_v59, %v247_v59 }
 0x39f   :  { %812 = vmatmul.msk.bf16.vlgmr.msrb.gmra.mxu0 %vm226_vm9, %v249_v60  ;;  %814 = vmatmul.msk.bf16.vlgmr.msrb.gmra.mxu1 %vm50_vm0, %v295_v61 }
 0x3c6   :  { %v347_v62 = vpop.xlane.xlu1 %346 }
 0x3c7   :  { %v349_v63 = vsub.f32 %v341_v51, %v347_v62 }
 0x3c9   :  { %v352_v1 = vmul.f32 1.442695, %v349_v63 }
 0x3cb   :  { %972 = vpow2.f32 %v352_v1 }
 0x3d1   :  { %v973_v3 = vpop.eup %972 }
 0x3d2   :  { %v357_v4 = vsel %vm226_vm9, %v973_v3, 0.0 }
 0x3d3   :  { %358 = vadd.xlane.f32.xlu2 %v357_v4 }
 0x40c   :  { %v288_v5 = vpop.f32.mrf.mxu1 }
 0x40d   :  { %v293_v7 = vpack.c.bf16 %v288_v5, %v288_v5 }
 0x40f   :  { %v419_v14 = vunpack.c.l.b16 %v293_v7 }
 0x414   :  { %v290_v6 = vpop.f32.mrf.mxu1 }
 0x41c   :  { %v269_v8 = vpop.f32.mrf.mxu0  ;;  %v313_v9 = vpop.f32.mrf.mxu1 }
 0x41d   :  { %v292_v11 = vpack.c.bf16 %v269_v8, %v269_v8  ;;  %v340_v13 = vmul.f32 0.17677669, %v313_v9 }
 0x41f   :  { %v418_v15 = vunpack.c.l.b16 %v292_v11  ;;  %v342_v16 = vsel %vm226_vm9, %v340_v13, -inf  ;;  %v845_v11 = vld [vmem:[%s1336_s9 + $0x10] sm:$0xf] }
 0x420   :  { %343 = vmax.xlane.f32.xlu0 %v342_v16  ;;  %v847_v16 = vld [vmem:[%s1336_s9 + $0x18] sm:$0xf0] }
 0x421   :  { %v420_v17 = vpack.c.b16 %v419_v14, %v418_v15  ;;  %v927_v14 = vld [vmem:[%s1336_s9 + $0x14] sm:$0xf] }
 0x424   :  { %v271_v18 = vpop.f32.mrf.mxu0  ;;  %v315_v19 = vpop.f32.mrf.mxu1 }
 0x425   :  { %v850_v18 = vor.u32 %v927_v14, %v847_v16 }
 0x434   :  { %393 = vrot.lane.b32.xlu0 %v392_v22, %s1013_s30  ;;  %v926_v22 = vld [vmem:[%s1336_s9 + $0x4] sm:$0xf0] }
 0x446   :  { %v359_v26 = vpop.xlane.xlu2 %358 }
 0x493   :  { %v344_v23 = vpop.xlane.xlu0 %343 }
 0x494   :  { %v348_v24 = vsub.f32 %v340_v13, %v344_v23  ;;  %v928_v13 = vld [vmem:[%s1336_s9 + $0x14] sm:$0xf0]  ;;  %v925_v23 = vld [vmem:[%s1336_s9 + $0x4] sm:$0xf] }
 0x495   :  { %v846_v15 = vor.u32 %v928_v13, %v845_v11 }
 0x496   :  { %v350_v25 = vmul.f32 1.442695, %v348_v24 }
 0x497   :  { %582 = vmatpush.bf16.msrb.mxu3 %v846_v15 }
 0x498   :  { %974 = vpow2.f32 %v350_v25  ;;  %v838_v25 = vor.u32 %v926_v22, %v837_v21 }
 0x499   :  { %976 = vrcp.f32 %v359_v26  ;;  %v839_v26 = vld [vmem:[%s1336_s9 + $0x8] sm:$0xf0] }
 0x49b   :  { %583 = vmatpush.bf16.msrb.mxu3 %v838_v25  ;;  %v957_v25 = vld [vmem:[%s1339_s12] ss:$0 sm:$0xff]  ;;  %s1015_s12 = smov 128  }
 0x49e   :  { %v975_v27 = vpop.eup %974 }
 0x49f   :  { %v354_v28 = vsel %vm226_vm9, %v975_v27, 0.0  ;;  %v977_v29 = vpop.eup %976 }
 0x4a0   :  { %355 = vadd.xlane.f32.xlu2 %v354_v28  ;;  %v363_v30 = vmul.f32 %v977_v29, %v973_v3  ;;  %v944_v28 = vld [vmem:[%s1338_s11 + $0x78] sm:$0xff] }
 0x4a1   :  { %v936_v29 = vld [vmem:[%s1338_s11 + $0x38] sm:$0xff]  ;;  %756 = vmatpush.bf16.msra.mxu2 %v944_v28 }
 0x4a2   :  { %v365_v20 = vpack.c.bf16 %v363_v30, %v363_v30 }
 0x4a6   :  { %v394_v31 = vpop.permute.xlu0 %393 }
 0x4a7   :  { %v399_v32 = vsel %vm256_vm8, %v394_v31, 0 }
 0x4a8   :  { %408 = vmatpush.bf16.msra.mxu1 %v399_v32  ;;  %v943_v32 = vld [vmem:[%s1338_s11 + $0x70] sm:$0xff] }
 0x4a9   :  { %757 = vmatpush.bf16.msra.mxu2 %v943_v32 }
 0x4ab   :  { %817 = vmatmul.msk.bf16.vlgmr.msra.gmra.mxu1 %vm226_vm9, %v365_v20  ;;  %v935_v20 = vld [vmem:[%s1338_s11 + $0x30] sm:$0xff] }
 0x4ac   :  { %742 = vmatpush.bf16.msrb.mxu1 %v936_v29 }
 0x4b0   :  { %743 = vmatpush.bf16.msrb.mxu1 %v935_v20 }
 0x4b8   :  { %369 = vrot.lane.b32.xlu2 %v368_v34, %s1013_s30 }
 0x513   :  { %v356_v35 = vpop.xlane.xlu2 %355 }
 0x514   :  { %978 = vrcp.f32 %v356_v35 }
 0x51a   :  { %v979_v36 = vpop.eup %978 }
 0x51b   :  { %v362_v37 = vmul.f32 %v979_v36, %v975_v27  ;;  %v370_v38 = vpop.permute.xlu2 %369  ;;  %v842_v27 = vor.u32 %v925_v23, %v839_v26  ;;  %v942_v36 = vld [vmem:[%s1338_s11 + $0x68] sm:$0xff] }
 0x51c   :  { %v375_v39 = vsel %vm256_vm8, %v370_v38, 0  ;;  %758 = vmatpush.bf16.msra.mxu2 %v942_v36 }
 0x51d   :  { %v364_v40 = vpack.c.bf16 %v362_v37, %v362_v37  ;;  %384 = vmatpush.bf16.msra.mxu0 %v375_v39  ;;  %v941_v39 = vld [vmem:[%s1338_s11 + $0x60] sm:$0xff] }
 0x520   :  { %816 = vmatmul.msk.bf16.vlgmr.msra.gmra.mxu0 %vm226_vm9, %v364_v40  ;;  %759 = vmatpush.bf16.msra.mxu2 %v941_v39 }
 0x521   :  { %596 = vmatpush.bf16.msrb.mxu0 %v850_v18 }
 0x525   :  { %597 = vmatpush.bf16.msrb.mxu0 %v842_v27 }
 0x528   :  { %v410_v41 = vpop.f32.mrf.mxu1 }
 0x529   :  { %v415_v46 = vpack.c.bf16 %v410_v41, %v410_v41 }
 0x52b   :  { %v424_v49 = vunpack.c.l.b16 %v415_v46 }
 0x530   :  { %v412_v42 = vpop.f32.mrf.mxu1 }
 0x59d   :  { %v386_v47 = vpop.f32.mrf.mxu0 }
 0x59e   :  { %v414_v48 = vpack.c.bf16 %v386_v47, %v386_v47  ;;  %v955_v47 = vld [vmem:[%s1334_s7] ss:$0 sm:$0xff] }
 0x5a0   :  { %v423_v50 = vunpack.c.l.b16 %v414_v48 }
 0x5a2   :  { %v425_v51 = vpack.c.b16 %v424_v49, %v423_v50 }
 0x5a4   :  { %426 = vrot.lane.b32.xlu1 %v425_v51, %s1012_s2  ;;  %v956_v51 = vld [vmem:[%s1335_s8] ss:$0 sm:$0xff] }
 0x5a5   :  { %v388_v52 = vpop.f32.mrf.mxu0 }
 0x616   :  { %v427_v53 = vpop.permute.xlu1 %426 }
 0x617   :  { %v430_v54 = vsel %vm50_vm0, %v420_v17, %v427_v53 }
 0x618   :  { %834 = vmatmul.msk.bf16.vlgmr.msrb.gmra.mxu2 %vm467_vm10, %v430_v54 }
 0x69b   :  { %v479_v56 = vpop.f32.mrf.mxu2 }
 0x69c   :  { %v480_v57 = vadd.f32 %v954_v55, %v479_v56 }
 0x69e   :  { %v1207_v58 = vadd.f32 %v480_v57, %v1090_v0 }
 0x6a0   :  { %v488_v59 = vsel %vm50_vm0, %v1207_v58, 0.0 }
 0x6a1   :  { %489 = vadd.xlane.f32.xlu2 %v488_v59  ;;  %v940_v59 = vld [vmem:[%s1338_s11 + $0x58] sm:$0xff] }
 0x6a2   :  { %760 = vmatpush.bf16.msra.mxu2 %v940_v59 }
 0x6a3   :  { %v481_v60 = vpop.f32.mrf.mxu2 }
 0x6a4   :  { %v482_v61 = vadd.f32 %v954_v55, %v481_v60  ;;  %v933_v60 = vld [vmem:[%s1338_s11 + $0x20] sm:$0xff] }
 0x6a6   :  { %v1212_v62 = vadd.f32 %v482_v61, %v1097_v2  ;;  %v939_v61 = vld [vmem:[%s1338_s11 + $0x50] sm:$0xff] }
 0x6a7   :  { %761 = vmatpush.bf16.msra.mxu2 %v939_v61 }
 0x6a8   :  { %v491_v63 = vsel %vm50_vm0, %v1212_v62, 0.0 }
 0x6a9   :  { %492 = vadd.xlane.f32.xlu0 %v491_v63  ;;  %v932_v63 = vld [vmem:[%s1338_s11 + $0x18] sm:$0xff] }
 0x714   :  { %v490_v1 = vpop.xlane.xlu2 %489 }
 0x715   :  { %v494_v3 = vmul.f32 %v490_v1, %v1101_v10  ;;  %v938_v1 = vld [vmem:[%s1338_s11 + $0x48] sm:$0xff] }
 0x716   :  { %762 = vmatpush.bf16.msra.mxu2 %v938_v1 }
 0x717   :  { %v1218_v4 = vsub.f32 %v1207_v58, %v494_v3  ;;  %v931_v3 = vld [vmem:[%s1338_s11 + $0x10] sm:$0xff] }
 0x719   :  { %v498_v0 = vmul.f32 %v1218_v4, %v1218_v4 }
 0x71b   :  { %v500_v5 = vsel %vm50_vm0, %v498_v0, 0.0  ;;  %v930_v0 = vld [vmem:[%s1338_s11 + $0x8] sm:$0xff] }
 0x71c   :  { %v493_v6 = vpop.xlane.xlu0 %492  ;;  %501 = vadd.xlane.f32.xlu1 %v500_v5  ;;  %v929_v5 = vld [vmem:[%s1338_s11] sm:$0xff] }
 0x71d   :  { %v495_v2 = vmul.f32 %v493_v6, %v1101_v10  ;;  %v547_v6 = vld [vmem:[%s1337_s10] sm:$0x3] }
 0x71e   :  { %v549_v13 = vperm.slane %v547_v6, 0 }
 0x71f   :  { %v1225_v7 = vsub.f32 %v1212_v62, %v495_v2 }
 0x721   :  { %v499_v8 = vmul.f32 %v1225_v7, %v1225_v7 }
 0x723   :  { %v503_v9 = vsel %vm50_vm0, %v499_v8, 0.0 }
 0x724   :  { %504 = vadd.xlane.f32.xlu2 %v503_v9 }
 0x78f   :  { %v502_v17 = vpop.xlane.xlu1 %501 }
 0x790   :  { %v506_v19 = vmul.f32 %v502_v17, %v1101_v10 }
 0x792   :  { %v508_v24 = vadd.f32 1e-05, %v506_v19 }
 0x794   :  { %980 = vrsqrt.f32 %v508_v24  ;;  %vm516_vm12 = vweird.f32 %v508_v24 }
 0x797   :  { %v505_v30 = vpop.xlane.xlu2 %504 }
 0x798   :  { %v507_v31 = vmul.f32 %v505_v30, %v1101_v10  ;;  %v934_v10 = vld [vmem:[%s1338_s11 + $0x28] sm:$0xff] }
 0x799   :  { %744 = vmatpush.bf16.msrb.mxu1 %v934_v10 }
 0x79a   :  { %v981_v33 = vpop.eup %980  ;;  %v509_v34 = vadd.f32 1e-05, %v507_v31 }
 0x79b   :  { %v511_v35 = vmul.f32 %v981_v33, %v508_v24  ;;  %vm517_vm11 = vweird.f32 %v981_v33 }
 0x79c   :  { %982 = vrsqrt.f32 %v509_v34  ;;  %vm518_vm13 = vmor %vm516_vm12, %vm517_vm11  ;;  %vm526_vm15 = vweird.f32 %v509_v34 }
 0x79d   :  { %v512_v37 = vmul.f32 %v981_v33, %v511_v35  ;;  %745 = vmatpush.bf16.msrb.mxu1 %v933_v60 }
 0x79f   :  { %v513_v38 = vmul.f32 0.5, %v512_v37 }
 0x7a1   :  { %v514_v40 = vsub.f32 1.5, %v513_v38  ;;  %746 = vmatpush.bf16.msrb.mxu1 %v932_v63 }
 0x7a2   :  { %v983_v41 = vpop.eup %982 }
 0x7a3   :  { %v515_v42 = vmul.f32 %v981_v33, %v514_v40  ;;  %v521_v12 = vmul.f32 %v983_v41, %v509_v34  ;;  %vm527_vm14 = vweird.f32 %v983_v41 }
 0x7a4   :  { %vm528_vm1 = vmor %vm526_vm15, %vm527_vm14 }
 0x7a5   :  { %v522_v43 = vmul.f32 %v983_v41, %v521_v12  ;;  %v519_v44 = vsel %vm518_vm13, %v981_v33, %v515_v42  ;;  %747 = vmatpush.bf16.msrb.mxu1 %v931_v3 }
 0x7a6   :  { %v530_v48 = vmul.f32 %v519_v44, %v1218_v4  ;;  %v937_v4 = vld [vmem:[%s1338_s11 + $0x40] sm:$0xff] }
 0x7a7   :  { %v523_v45 = vmul.f32 0.5, %v522_v43  ;;  %763 = vmatpush.bf16.msra.mxu2 %v937_v4 }
 0x7a8   :  { %v535_v52 = vmul.f32 %v955_v47, %v530_v48 }
 0x7a9   :  { %v524_v46 = vsub.f32 1.5, %v523_v45  ;;  %748 = vmatpush.bf16.msrb.mxu1 %v930_v0 }
 0x7aa   :  { %v540_v55 = vadd.f32 %v956_v51, %v535_v52 }
 0x7ab   :  { %v525_v49 = vmul.f32 %v983_v41, %v524_v46 }
 0x7ad   :  { %v529_v50 = vsel %vm528_vm1, %v983_v41, %v525_v49  ;;  %749 = vmatpush.bf16.msrb.mxu1 %v929_v5 }
 0x7ae   :  { %v531_v53 = vmul.f32 %v529_v50, %v1225_v7  ;;  %v550_v7 = vperm.slane %v547_v6, 1 }
 0x7b0   :  { %v536_v54 = vmul.f32 %v955_v47, %v531_v53 }
 0x7b2   :  { %v541_v56 = vadd.f32 %v956_v51, %v536_v54 }
 0x7b4   :  { %v542_v57 = vpack.c.bf16 %v541_v56, %v540_v55 }
 0x7b6   :  { %851 = vmatmul.msk.bf16.vlgmr.msrb.gmra.mxu3 %vm50_vm0, %v542_v57  ;;  %852 = vmatmul.msk.bf16.vlgmr.msrb.gmra.mxu0 %vm50_vm0, %v542_v57 }
 0x833   :  { %v599_v2 = vpop.f32.mrf.mxu0 }
 0x834   :  { %v600_v9 = vadd.f32 %v599_v2, %v550_v7 }
 0x836   :  { %v605_v15 = vmax.f32 %v600_v9, 0.0 }
 0x839   :  { %v585_v8 = vpop.f32.mrf.mxu3 }
 0x83a   :  { %v586_v17 = vadd.f32 %v585_v8, %v549_v13 }
 0x83b   :  { %v601_v11 = vpop.f32.mrf.mxu0 }
 0x83c   :  { %v602_v14 = vadd.f32 %v601_v11, %v550_v7  ;;  %v604_v22 = vmax.f32 %v586_v17, 0.0 }
 0x83e   :  { %v607_v16 = vmax.f32 %v602_v14, 0.0 }
 0x840   :  { %v609_v18 = vpack.c.bf16 %v607_v16, %v605_v15 }
 0x841   :  { %v587_v19 = vpop.f32.mrf.mxu3 }
 0x842   :  { %v588_v21 = vadd.f32 %v587_v19, %v549_v13  ;;  %764 = vmatmul.bf16.vlgmr.msra.gmra.mxu2 %v609_v18 }
 0x844   :  { %v606_v23 = vmax.f32 %v588_v21, 0.0 }
 0x846   :  { %v608_v24 = vpack.c.bf16 %v606_v23, %v604_v22 }
 0x848   :  { %750 = vmatmul.bf16.vlgmr.msrb.gmra.mxu1 %v608_v24 }
 0x8c5   :  { %v751_v26 = vpop.f32.mrf.mxu1  ;;  %v765_v27 = vpop.f32.mrf.mxu2 }
 0x8c6   :  { %v752_v28 = vadd.f32 %v957_v25, %v751_v26 }
 0x8c8   :  { %v766_v29 = vadd.f32 %v765_v27, %v752_v28 }
 0x8ca   :  { %v770_v30 = vadd.f32 %v766_v29, %v1207_v58 }
 0x8cc   :  { %772 = vst.msk [vmem:[#allocation2] sm:$0xff] %vm50_vm0, %v770_v30 }
 0x8cd   :  { %v753_v31 = vpop.f32.mrf.mxu1  ;;  %v767_v20 = vpop.f32.mrf.mxu2 }
 0x8ce   :  { %v754_v32 = vadd.f32 %v957_v25, %v753_v31 }
 0x8d0   :  { %v768_v33 = vadd.f32 %v767_v20, %v754_v32 }
 0x8d2   :  { %v771_v34 = vadd.f32 %v768_v33, %v1212_v62 }
 0x8d4   :  { %773 = vst.msk [vmem:[#allocation2 + $0x8] sm:$0xff] %vm50_vm0, %v771_v34 }
 0x8d5   :  { %786 = dma.vmem_to_hbm [thread:$0]  %s779_s25, 256, %s781_s27, [#allocation3], %s1015_s12, %s1015_s12, %s1016_s28  }
 0x8d6   :  { %1008 = dma.done.wait [#allocation3], 256  }
 0x8d7   :  { %1009 = vsyncadd [#allocation3], 4294967040 }
 0x8d8   :  { %791 = vsyncpa [#allocation3], 1 }

</bundles_post_ra>
